<compile_context>
chip_gen: v5e
topology: v5e:2x2
jax: 0.10.0
libtpu: 0.0.40
codegen_flags: <defaults>
</compile_context>

<pallas_src>
import math
from functools import partial

import jax
import jax.numpy as jnp
from jax.experimental import pallas as pl
from jax.experimental.pallas import tpu as pltpu

_BLOCK_CAP = 4 * 1024 * 1024    # target per-block bytes (near the copy-roofline knee)
_BLOCK_FLOOR = 1 * 1024 * 1024  # below this, prefer ragged tiling over tiny divisors
_MAX_BLOCK = 12 * 1024 * 1024   # hard per-block ceiling (4 bufs must fit under clamp)
_VMEM_CLAMP = 48 * 1024 * 1024  # v7x-safe scoped-VMEM ceiling


def _vmem_limit(block_bytes):
    # 2x-in + 2x-out double buffering plus slack, clamped for v7x (64 MiB VMEM).
    return int(min(_VMEM_CLAMP, max(32 * 1024 * 1024, 6 * block_bytes)))


def _largest_divisor_leq(n, cap):
    cap = max(1, min(n, int(cap)))
    for d in range(cap, 0, -1):
        if n % d == 0:
            return d
    return 1


# ---------------------------------------------------------------------------
# Kernels
# ---------------------------------------------------------------------------
def _copy_kernel(x_ref, o_ref):
    # Pure data movement: the roll is done by the input index_map.
    o_ref[...] = x_ref[...]


def _roll_lane_kernel(x_ref, o_ref, *, shift):
    # x_ref/o_ref: (pre_tile, L).  Static-shift roll along the lane axis via the
    # XLU (otherwise idle in a copy kernel); matches jnp.roll semantics.
    o_ref[...] = pltpu.roll(x_ref[...], shift, axis=1)


def _roll_slab_kernel(x_ref, o_ref, *, shift):
    # x_ref/o_ref: (pre_tile, n, post_tile).  Conservative two-slice roll along
    # axis 1 (second-minor); used only for fully unaligned trailing extents.
    x = x_ref[...]
    n = x.shape[1]
    o_ref[...] = jnp.concatenate([x[:, n - shift:, :], x[:, :n - shift, :]], axis=1)


# ---------------------------------------------------------------------------
# Path A: trailing extent 128-aligned -> roll purely in the input index_map.
# ---------------------------------------------------------------------------
def _roll_dense(x, pre, n, post, s, itemsize, cost):
    rows = post // 128
    x4 = x.reshape(pre, n, rows, 128)           # copy-free row-major reshape
    lane_bytes = 128 * itemsize
    slab_bytes = rows * lane_bytes               # one (pre, n) slab

    if slab_bytes <= _BLOCK_CAP:
        # Small slabs: take the full row extent and widen across `pre`.
        row_tile = rows
        pre_tile = _largest_divisor_leq(pre, max(1, _BLOCK_CAP // slab_bytes))
    else:
        # Big slabs: tile rows (sublane-packed); guarantee a >=1 MiB floor by
        # falling back to ragged (pl.cdiv) tiling instead of a tiny divisor.
        pre_tile = 1
        pack = max(8, 32 // itemsize)            # 8 f32 / 16 bf16 / 32 int8
        max_rows = max(pack, (_BLOCK_CAP // lane_bytes) // pack * pack)
        row_tile = 0
        t = min(max_rows, (rows // pack) * pack)
        while t >= pack:
            if rows % t == 0:
                row_tile = t
                break
            t -= pack
        if row_tile == 0 or row_tile * lane_bytes < _BLOCK_FLOOR:
            row_tile = min(rows, max_rows)       # ragged last block

    block = (pre_tile, 1, row_tile, 128)
    block_bytes = pre_tile * row_tile * lane_bytes
    # Rolled axis `n` leads the grid (largest typical extent) so megacore/v7x
    # splits evenly even when pre == 1; all axes are independent.
    grid = (n, pre // pre_tile, pl.cdiv(rows, row_tile))

    out4 = pl.pallas_call(
        _copy_kernel,
        out_shape=jax.ShapeDtypeStruct(x4.shape, x4.dtype),
        grid=grid,
        in_specs=[pl.BlockSpec(block, lambda i, pb, rb: (pb, (i - s + n) % n, rb, 0))],
        out_specs=pl.BlockSpec(block, lambda i, pb, rb: (pb, i, rb, 0)),
        compiler_params=pltpu.CompilerParams(
            dimension_semantics=("parallel",) * len(grid),
            vmem_limit_bytes=_vmem_limit(block_bytes),
        ),
        cost_estimate=cost,
    )(x4)
    return out4.reshape(x.shape)


# ---------------------------------------------------------------------------
# Path B: flatten (n, post) -> L and roll the lane axis by s*post (lane-dense).
# ---------------------------------------------------------------------------
def _pick_pre_tile_lane(pre, slab_bytes, cap=_BLOCK_CAP):
    """Second-to-last block dim for (pre, L) blocks: multiple of 8 or full."""
    if pre <= 8 or pre * slab_bytes <= cap:
        return pre, 1
    max_pre = max(8, ((cap // slab_bytes) // 8) * 8)
    t = min(max_pre, (pre // 8) * 8)
    while t >= 8:
        if pre % t == 0:
            return t, pre // t
        t -= 8
    return max_pre, pl.cdiv(pre, max_pre)        # ragged last block


def _roll_flat_lane(x, pre, L, shift, itemsize, cost):
    x2 = x.reshape(pre, L)                       # copy-free row-major reshape
    slab_bytes = L * itemsize
    pre_tile, steps = _pick_pre_tile_lane(pre, slab_bytes)
    block_bytes = pre_tile * slab_bytes
    if block_bytes > _MAX_BLOCK:
        # TODO(synk): tile the flattened lane axis (stitch the wrap-around
        # chunk) for absurdly large slabs; XLA roll as a rare escape hatch.
        return jnp.roll(x2, shift, axis=1).reshape(x.shape)

    block = (pre_tile, L)
    out2 = pl.pallas_call(
        partial(_roll_lane_kernel, shift=shift),
        out_shape=jax.ShapeDtypeStruct(x2.shape, x2.dtype),
        grid=(steps,),
        in_specs=[pl.BlockSpec(block, lambda p: (p, 0))],
        out_specs=pl.BlockSpec(block, lambda p: (p, 0)),
        compiler_params=pltpu.CompilerParams(
            dimension_semantics=("parallel",),
            vmem_limit_bytes=_vmem_limit(block_bytes),
        ),
        cost_estimate=cost,
    )(x2)
    return out2.reshape(x.shape)


# ---------------------------------------------------------------------------
# Path C: fully unaligned trailing extent -> conservative slab roll.
# ---------------------------------------------------------------------------
def _roll_slab(x, pre, n, post, s, itemsize, cost):
    x3 = x.reshape(pre, n, post)
    slab_bytes = n * post * itemsize
    if slab_bytes <= _BLOCK_CAP:
        pre_tile = _largest_divisor_leq(pre, max(1, _BLOCK_CAP // slab_bytes))
        post_tile = post
        grid = (pre // pre_tile, 1)
    else:
        # Tile `post` with multiple-of-128 ragged tiles so VMEM stays bounded
        # (v7x 64 MiB) and the pipeline has >1 step even when pre is small.
        pre_tile = 1
        post_tile = max(128, (_BLOCK_CAP // (n * itemsize)) // 128 * 128)
        grid = (pre, pl.cdiv(post, post_tile))

    block = (pre_tile, n, post_tile)
    block_bytes = pre_tile * n * post_tile * itemsize
    if block_bytes > _MAX_BLOCK:
        # TODO(synk): also tile `n` (two-slice DMA) for huge unaligned slabs.
        return jnp.roll(x3, s, axis=1).reshape(x.shape)

    out3 = pl.pallas_call(
        partial(_roll_slab_kernel, shift=s),
        out_shape=jax.ShapeDtypeStruct(x3.shape, x3.dtype),
        grid=grid,
        in_specs=[pl.BlockSpec(block, lambda p, q: (p, 0, q))],
        out_specs=pl.BlockSpec(block, lambda p, q: (p, 0, q)),
        compiler_params=pltpu.CompilerParams(
            dimension_semantics=("parallel", "parallel"),
            vmem_limit_bytes=_vmem_limit(block_bytes),
        ),
        cost_estimate=cost,
    )(x3)
    return out3.reshape(x.shape)


# ---------------------------------------------------------------------------
# Public wrapper
# ---------------------------------------------------------------------------
def cross_region(x, step=1, dim=1):
    """Pallas equivalent of CrossRegion(step, dim).forward(x) == torch.roll(x, step, dim)."""
    ndim = x.ndim
    dim = dim % ndim
    n = x.shape[dim]
    if n == 0 or x.size == 0:
        return x
    s = step % n
    if s == 0:
        return x  # identity roll: skip the redundant HBM round trip

    pre = math.prod(x.shape[:dim])
    post = math.prod(x.shape[dim + 1:])
    itemsize = x.dtype.itemsize
    nbytes = x.size * itemsize
    cost = pl.CostEstimate(flops=0, transcendentals=0, bytes_accessed=2 * nbytes)

    if post % 128 == 0:
        return _roll_dense(x, pre, n, post, s, itemsize, cost)
    L = n * post
    if L % 128 == 0:
        return _roll_flat_lane(x, pre, L, s * post, itemsize, cost)
    return _roll_slab(x, pre, n, post, s, itemsize, cost)


if __name__ == "__main__":
    k0, k1 = jax.random.split(jax.random.PRNGKey(0))
    # NCHW input, matching the PyTorch module's expected conv-style layout.
    x = jax.random.normal(k0, (2, 4, 16, 16), dtype=jnp.float32)

    # Module defaults: step=1, dim=1 (channel roll) -> dense index_map path (A).
    y = jax.block_until_ready(cross_region(x, step=1, dim=1))
    assert y.shape == x.shape and y.dtype == x.dtype
    assert jnp.array_equal(y, jnp.roll(x, 1, axis=1)), "mismatch (dim=1)"

    # Height roll: post=W=16 (not 128-aligned) but n*post=256 -> flattened
    # lane-roll path (B).
    y2 = jax.block_until_ready(cross_region(x, step=3, dim=2))
    assert jnp.array_equal(y2, jnp.roll(x, 3, axis=2)), "mismatch (dim=2)"

    # Negative step and full-cycle identity on the dense path.
    y3 = jax.block_until_ready(cross_region(x, step=-1, dim=1))
    assert jnp.array_equal(y3, jnp.roll(x, -1, axis=1)), "mismatch (step=-1)"
    y4 = jax.block_until_ready(cross_region(x, step=4, dim=1))
    assert jnp.array_equal(y4, x), "mismatch (identity roll)"

    # Fully unaligned trailing extent -> conservative slab path (C).
    x5 = jax.random.normal(k1, (2, 4, 6, 10), dtype=jnp.float32)
    y5 = jax.block_until_ready(cross_region(x5, step=1, dim=1))
    assert jnp.array_equal(y5, jnp.roll(x5, 1, axis=1)), "mismatch (unaligned dim=1)"

    print("KERNEL_OK")
</pallas_src>

<mosaic_0001>
module attributes {stable_mosaic.version = 11 : i64} {
  func.func @_copy_kernel(%arg0: i32, %arg1: i32, %arg2: i32, %arg3: memref<2x1x2x128xf32, #tpu.memory_space<vmem>>, %arg4: memref<2x1x2x128xf32, #tpu.memory_space<vmem>>) attributes {dimension_semantics = [#tpu.dimension_semantics<parallel>, #tpu.dimension_semantics<parallel>, #tpu.dimension_semantics<parallel>], iteration_bounds = array<i64: 4, 1, 1>, scalar_prefetch = 0 : i64, scratch_operands = 0 : i64, tpu.core_type = #tpu.core_type<tc>, window_params = [{transform_indices = @transform_0, window_bounds = array<i64: 2, 1, 2, 128>}, {transform_indices = @transform_1, window_bounds = array<i64: 2, 1, 2, 128>}]} {
    %c0 = arith.constant 0 : index
    %c0_0 = arith.constant 0 : index
    %c0_1 = arith.constant 0 : index
    %c0_2 = arith.constant 0 : index
    %0 = vector.load %arg3[%c0, %c0_0, %c0_1, %c0_2] : memref<2x1x2x128xf32, #tpu.memory_space<vmem>>, vector<2x1x2x128xf32>
    %c0_3 = arith.constant 0 : index
    %c0_4 = arith.constant 0 : index
    %c0_5 = arith.constant 0 : index
    %c0_6 = arith.constant 0 : index
    %1 = vector.load %arg4[%c0_3, %c0_4, %c0_5, %c0_6] : memref<2x1x2x128xf32, #tpu.memory_space<vmem>>, vector<2x1x2x128xf32>
    tpu.vector_store %arg4[%c0_3, %c0_4, %c0_5, %c0_6], %0 {strides = array<i32>} : memref<2x1x2x128xf32, #tpu.memory_space<vmem>>, vector<2x1x2x128xf32>,
    return
  }
  func.func @transform_0(%arg0: i32, %arg1: i32, %arg2: i32) -> (i32, i32, i32, i32) {
    %c1_i32 = arith.constant 1 : i32
    %0 = arith.subi %arg0, %c1_i32 : i32
    %c4_i32 = arith.constant 4 : i32
    %1 = arith.addi %0, %c4_i32 : i32
    %c4_i32_0 = arith.constant 4 : i32
    %c0_i32 = arith.constant 0 : i32
    %2 = arith.cmpi eq, %c4_i32_0, %c0_i32 : i32
    %c1_i32_1 = arith.constant 1 : i32
    %3 = arith.select %2, %c1_i32_1, %c4_i32_0 : i32
    %4 = arith.remsi %1, %3 : i32
    %c0_i32_2 = arith.constant 0 : i32
    %5 = arith.cmpi ne, %4, %c0_i32_2 : i32
    %c0_i32_3 = arith.constant 0 : i32
    %6 = arith.cmpi slt, %4, %c0_i32_3 : i32
    %c0_i32_4 = arith.constant 0 : i32
    %7 = arith.cmpi slt, %3, %c0_i32_4 : i32
    %8 = arith.xori %6, %7 : i1
    %9 = arith.andi %8, %5 : i1
    %10 = arith.addi %4, %3 : i32
    %11 = arith.select %9, %10, %4 : i32
    %c0_i32_5 = arith.constant 0 : i32
    %c0_i32_6 = arith.constant 0 : i32
    return %arg1, %11, %arg2, %c0_i32_5 : i32, i32, i32, i32
  }
  func.func @transform_1(%arg0: i32, %arg1: i32, %arg2: i32) -> (i32, i32, i32, i32) {
    %c0_i32 = arith.constant 0 : i32
    %c0_i32_0 = arith.constant 0 : i32
    return %arg1, %arg0, %arg2, %c0_i32 : i32, i32, i32, i32
  }
}

</mosaic_0001>

<bundles_post_ra>
// kernel: tpu_custom_call.1
= control target key start
LH: loop header
LB: loop body
LE: loop exit
PB: predicated region body
PF: predicated region fallthrough
CT: control target
= control target key end

     0   :  { %6 = vsyncpa [#allocation3], 0  ;;  %s770_s0 = inlined_call_operand.hbm [shape: f32[2,4,2,128], index: 0, kind: input, shape index: {}]   ;;  %s771_s1 = inlined_call_operand.hbm [shape: f32[2,4,2,128], index: 1, kind: output, shape index: {}]  }
   0x1   :  { %8 = vsyncpa [#allocation3 + $0x1], 0 }
   0x2   :  { %9 = vsyncpa [#allocation4], 0 }
   0x3   :  { %11 = vsyncpa [#allocation4 + $0x1], 0  ;;  %s602_s6 = smov 0   ;;  %s604_s7 = smov 0  }
   0x4   :  { %s606_s8 = smov 0   ;;  %s608_s9 = smov 0  }
   0x5   :  { %s610_s10 = smov 0   ;;  %s612_s11 = smov 0  }
   0x6   :  { %s614_s12 = smov 0   ;;  %s616_s13 = smov 0  }
   0x7   :  { %s618_s14 = smov 0  }
   0x8 LB: > { %s334_s15 = sadd.s32 4294967295, %s584_s14   ;;  %s335_s16 = sadd.s32 4294967294, %s584_s14   ;;  %s584_s14 = sphi %s618_s14, %s17_s14   ;;  %s580_s13 = sphi %s616_s13, %s785_s13   ;;  %s576_s12 = sphi %s614_s12, %s784_s12   ;;  %s572_s11 = sphi %s612_s11, %s783_s11   ;;  %s568_s10 = sphi %s610_s10, %s782_s10   ;;  %s564_s9 = sphi %s608_s9, %s781_s9   ;;  %s560_s8 = sphi %s606_s8, %s780_s8   ;;  %s556_s7 = sphi %s604_s7, %s779_s7   ;;  %s552_s6 = sphi %s602_s6, %s778_s6  }
   0x9   : > { %s36_s17 = sadd.s32 1, %s580_s13  ;;  %s40_s18 = sadd.s32 3, %s580_s13 }
   0xa   : > { %p38_p0 = scmp.ge.s32.totalorder %s36_s17, 4  ;;  %s42_s19 = ssub.s32 0, %s40_s18 }
   0xb   : > { %s73_s20 = sadd.s32 1, %s572_s11  ;;  %s336_s21 = smin.u32 %s42_s19, %s40_s18 }
   0xc   : > { %s787_s17 = smov (%p38_p0, %s36_s17), 0  ;;  %p80_p1 = scmp.ne.s32.totalorder %s572_s11, %s568_s10 }
   0xd   : > { %s44_s22 = sand.u32 3, %s336_s21   ;;  %s53_s23 = sadd.s32 3, %s787_s17 }
   0xe   : > { %s55_s24 = ssub.s32 0, %s53_s23  ;;  %p81_p2 = scmp.eq.s32.totalorder %s584_s14, 0 }
   0xf   : > { %p338_p3 = scmp.lt.s32.totalorder %s44_s22, 0  ;;  %s51_s25 = sadd.s32 4, %s44_s22 }
  0x10   : > { %s339_s26 = smin.u32 %s55_s24, %s53_s23  ;;  %p656_p4 = por %p81_p2, %p80_p1 }
  0x11   : > { %s789_s25 = smov (!%p338_p3, %s51_s25), %s44_s22  ;;  %s57_s28 = sand.u32 3, %s339_s26  }
  0x12   : > { %p86_p5 = scmp.ne.s32.totalorder %s568_s10, %s564_s9  ;;  %p87_p6 = scmp.eq.s32.totalorder %s334_s15, 0 }
  0x13   : > { %s97_s30 = ssub.s32 %s580_s13, %s787_s17  ;;  %p341_p8 = scmp.lt.s32.totalorder %s57_s28, 0 }
  0x14   : > { %p663_p7 = por %p87_p6, %p86_p5  ;;  %s64_s2 = sadd.s32 4, %s57_s28 }
  0x15   : > { %p101_p9 = scmp.eq.s32.totalorder %s97_s30, 0  ;;  %s103_s3 = sadd.s32 1, %s560_s8 }
  0x16   : > { %s791_s2 = smov (!%p341_p8, %s64_s2), %s57_s28  ;;  %p113_p10 = scmp.ne.s32.totalorder %s560_s8, %s556_s7 }
  0x17   : > { %s671_s4 = scalar_select %p101_p9, %s560_s8, %s103_s3  }
  0x18   : > { %s67_s5 = ssub.s32 %s789_s25, %s791_s2  ;;  %p114_p12 = scmp.eq.s32.totalorder %s334_s15, 3 }
  0x19   : > { %p71_p11 = scmp.eq.s32.totalorder %s67_s5, 0  ;;  %p119_p13 = scmp.ne.s32.totalorder %s556_s7, %s552_s6 }
  0x1a   : > { %p120_p0 = scmp.eq.s32.totalorder %s335_s16, 3  ;;  %p686_p1 = por %p114_p12, %p113_p10 }
  0x1b   : > { %s684_s9 = scalar_select %p71_p11, %s572_s11, %s73_s20  }
  0x1c   : > { %p690_p2 = por %p120_p0, %p119_p13  ;;  %p368_p3 = scmp.lt.s32.totalorder %s584_s14, 4 }
  0x1d   : > { %s140_s21 = sand.u32 1, %s572_s11   ;;  %s348_s22 = sshll.u32 %s789_s25, 1 }
  0x1e   : > { %s344_s15 = sshll.u32 %s140_s21, 2  ;;  %s165_s26 = scalar_lea.hbm %s770_s0, %s348_s22 }
  0x1f   : > { %s166_s16 = sshll.u32 %s165_s26, 4  ;;  %s144_s28 = scalar_lea.vmem [#allocation2], %s344_s15  ;;  %s167_s16 = int_to_ptr.hbm [resolvable:$true] %s166_s16 }
  0x20   : > { %s168_s20 = sshll.u32 %s144_s28, 4  ;;  %p701_p5 = pnand %p368_p3, %p656_p4  ;;  %s169_s20 = int_to_ptr.vmem [resolvable:$true] %s168_s20 }
  0x21   : > { %p349_p6 = scmp.ge.s32.totalorder %s584_s14, 1  ;;  %s141_s2 = scalar_lea.sflag [#allocation3], %s140_s21 }
  0x22   : > { %s448_s3 = sshra.s32 %s167_s16, 4  ;;  %p452_p9 = pneg %p701_p5  ;;  %s449_s3 = int_to_ptr.hbm [resolvable:$true] %s448_s3 }
  0x23   : > { %s450_s25 = scalar_lea.hbm %s449_s3, 4  ;;  %s455_s15 = scalar_lea.hbm %s770_s0, 16 }
  0x24   : > { %p451_p8 = scmp.ne.s32.totalorder %s449_s3, %s450_s25  ;;  %p456_p4 = scmp.lt.s32.totalorder %s449_s3, %s770_s0 }
  0x25   : > { %p457_p12 = scmp.lt.s32.totalorder %s455_s15, %s450_s25 }
  0x26   : > { %p453_p10 = pnand %p452_p9, %p451_p8 }
  0x27   : > { %p458_p13 = por %p457_p12, %p456_p4 }
  0x28   : > { %p454_p11 = pneg %p453_p10 }
  0x2a   : > { %p459_p0 = pnand %p458_p13, %p454_p11 }
  0x2c   : > { %462 = shalt.err (!%p459_p0)
}
  0x2d   : > { %s586_s21 = smov 128   ;;  %s587_s24 = smov 32  }
  0x2e   : > { %s588_s26 = smov 2   ;;  %p176_p3 = scmp.lt.s32.totalorder %s584_s14, 5 }
  0x2f   : > { %363 = dma.hbm_to_vmem [thread:$0]  (!%p701_p5), %s167_s16, 64, %s169_s20, %s141_s2, %s586_s21, %s587_s24, %s588_s26  }
  0x30   : > { %p177_p8 = pnand %p349_p6, %p176_p3 }
  0x31   : > { %s182_s28 = sand.u32 (!%p177_p8), 1, %s568_s10  }
  0x32   : > { %180 = sbr.rel (%p177_p8) target bundleno = 74 (0x4a), region = 24  ;;  %s350_s3 = sshll.u32 (!%p177_p8), %s182_s28, 2 }
  0x33   : > { %s183_s25 = scalar_lea.sflag (!%p177_p8), [#allocation3], %s182_s28  ;;  %s186_s5 = scalar_lea.vmem (!%p177_p8), [#allocation2], %s350_s3 }
  0x37   : > { %543 = dma.done.wait (%p663_p7), %s183_s25, 64  }
  0x38   : > { %545 = vsyncadd (%p663_p7), %s183_s25, 4294967232  ;;  %s203_s22 = sand.u32 1, %s556_s7   ;;  %s353_s16 = sshll.u32 %s576_s12, 1  ;;  %v221_v0 = vld [vmem:[%s186_s5] sm:$0xf]  }
  0x39   : > { %s351_s20 = sshll.u32 %s203_s22, 2  ;;  %s240_s15 = scalar_lea.hbm %s771_s1, %s353_s16 }
  0x3a   : > { %s205_s27 = scalar_lea.vmem [#allocation5], %s351_s20  ;;  %s243_s21 = sshll.u32 %s240_s15, 4  ;;  %s244_s21 = int_to_ptr.hbm [resolvable:$true] %s243_s21 }
  0x3b   : > { %s241_s23 = sshll.u32 %s205_s27, 4  ;;  %223 = vst [vmem:[%s205_s27] sm:$0xf] %v221_v0   ;;  %s226_s24 = scalar_lea.sflag [#allocation4], %s203_s22  ;;  %s242_s23 = int_to_ptr.vmem [resolvable:$true] %s241_s23 }
  0x3c   : > { %s492_s29 = sshra.s32 %s244_s21, 4  ;;  %s498_s3 = scalar_lea.hbm %s771_s1, 16  ;;  %s493_s29 = int_to_ptr.hbm [resolvable:$true] %s492_s29 }
  0x3d   : > { %s494_s26 = scalar_lea.hbm %s493_s29, 4  ;;  %p499_p9 = scmp.lt.s32.totalorder %s493_s29, %s771_s1 }
  0x3e   : > { %p495_p7 = scmp.ne.s32.totalorder %s493_s29, %s494_s26  ;;  %p500_p10 = scmp.lt.s32.totalorder %s498_s3, %s494_s26 }
  0x40   : > { %p496_p5 = pnand %p495_p7, %p686_p1  ;;  %p501_p11 = por %p500_p10, %p499_p9 }
  0x42   : > { %p497_p6 = pneg %p496_p5 }
  0x44   : > { %p502_p4 = pnand %p501_p11, %p497_p6 }
  0x46   : > { %505 = shalt.err (!%p502_p4)
}
  0x47   : > { %s589_s5 = smov 32   ;;  %s590_s22 = smov 128  }
  0x48   : > { %s591_s20 = smov 2  }
  0x49   : > { %358 = dma.vmem_to_hbm [thread:$0]  (%p686_p1), %s242_s23, 64, %s244_s21, %s226_s24, %s589_s5, %s590_s22, %s591_s20  }
  0x4a PF: > { %p369_p12 = scmp.ge.s32.totalorder %s584_s14, 2  ;;  %s258_s30 = sand.u32 1, %s552_s6  }
  0x4b   : > { %s259_s2 = scalar_lea.sflag [#allocation4], %s258_s30 }
  0x4c   : > { %p365_p13 = pnand %p369_p12, %p690_p2 }
  0x4e   : > { %p366_p0 = pneg %p365_p13 }
  0x50   : > { %547 = dma.done.wait (%p366_p0), %s259_s2, 64  }
  0x51   : > { %549 = vsyncadd (%p366_p0), %s259_s2, 4294967232  ;;  %s17_s14 = sadd.s32 1, %s584_s14   ;;  %s777_s18 = smov %s684_s9 }
  0x52   : > { %p14_p3 = scmp.ge.s32.totalorder %s17_s14, 6   ;;  %s778_s6 = smov %s556_s7 }
  0x53   : > { %s779_s7 = smov %s560_s8  ;;  %s780_s8 = smov %s671_s4 }
  0x54   : > { %s781_s9 = smov %s568_s10  ;;  %s782_s10 = smov %s572_s11 }
  0x55   : > { %s783_s11 = smov %s777_s18  ;;  %s784_s12 = smov %s580_s13 }
  0x56   : > { %s785_s13 = smov %s787_s17  ;;  %16 = sbr.rel (!%p14_p3) target bundleno = 8 (0x8), region = 69 }
  0x5b   :  { %265 = vsyncpa [#allocation3], 1 }
  0x5c   :  { %267 = vsyncpa [#allocation3 + $0x1], 1 }
  0x5d   :  { %268 = vsyncpa [#allocation4], 1 }
  0x5e   :  { %270 = vsyncpa [#allocation4 + $0x1], 1 }

</bundles_post_ra>
